<compile_context>
chip_gen: v7x
topology: tpu7x:2x2x1
jax: 0.10.0
libtpu: 0.0.40
codegen_flags: <defaults>
</compile_context>

<pallas_src>
import functools
import math

import jax
import jax.numpy as jnp
from jax.experimental import pallas as pl
from jax.experimental.pallas import tpu as pltpu


# ---------------------------------------------------------------------------
# Exact-GELU helper (matches torch.nn.GELU(approximate='none') to ~1e-7)
# ---------------------------------------------------------------------------
_INV_SQRT2 = 1.0 / math.sqrt(2.0)


def _erf(x):
    # Abramowitz & Stegun 7.1.26 rational approximation, max abs err ~1.5e-7.
    a1, a2, a3, a4, a5 = (0.254829592, -0.284496736, 1.421413741,
                          -1.453152027, 1.061405429)
    p = 0.3275911
    ax = jnp.abs(x)
    t = 1.0 / (1.0 + p * ax)
    poly = t * (a1 + t * (a2 + t * (a3 + t * (a4 + t * a5))))
    y = 1.0 - poly * jnp.exp(-ax * ax)
    return jnp.where(x < 0.0, -y, y)


def _gelu_exact(x):
    return 0.5 * x * (1.0 + _erf(x * _INV_SQRT2))


# ---------------------------------------------------------------------------
# Fused tiled linear kernel:  o = [gelu](x @ w + b)
# ---------------------------------------------------------------------------
def _linear_kernel(x_ref, w_ref, b_ref, o_ref, acc_ref, *, apply_gelu):
    k = pl.program_id(2)

    @pl.when(k == 0)
    def _():
        acc_ref[...] = jnp.zeros_like(acc_ref)

    acc_ref[...] += jnp.dot(x_ref[...], w_ref[...],
                            preferred_element_type=jnp.float32)

    @pl.when(k == pl.num_programs(2) - 1)
    def _():
        y = acc_ref[...] + b_ref[...].astype(jnp.float32)   # bias fused here
        if apply_gelu:                                       # GELU fused here
            y = _gelu_exact(y)
        # Dropout(p=0.0) is the identity (eval semantics).
        o_ref[...] = y.astype(o_ref.dtype)


def _pick_tile(dim, preferred, align):
    """Largest `align`-multiple divisor of `dim` that is <= preferred, else full dim."""
    if dim <= preferred:
        return dim
    t = (preferred // align) * align
    while t >= align:
        if dim % t == 0:
            return t
        t -= align
    return dim  # fall back to a single full-dim block


def pallas_linear(x2d, w, b, *, apply_gelu=False, out_dtype=jnp.float32,
                  tm=256, tk=512, tn=512):
    """x2d: (M, K); w: (K, N); b: (N,)  ->  (M, N) = [gelu](x2d @ w + b)."""
    M, K = x2d.shape
    K2, N = w.shape
    assert K == K2 and b.shape == (N,)

    tm = _pick_tile(M, tm, 8)      # sublane-aligned rows
    tk = _pick_tile(K, tk, 128)    # lane-aligned contraction tiles
    tn = _pick_tile(N, tn, 128)    # lane-dense output tiles
    grid = (M // tm, N // tn, K // tk)   # reduction axis last

    kernel = functools.partial(_linear_kernel, apply_gelu=apply_gelu)

    return pl.pallas_call(
        kernel,
        out_shape=jax.ShapeDtypeStruct((M, N), out_dtype),
        grid_spec=pltpu.PrefetchScalarGridSpec(
            num_scalar_prefetch=0,
            grid=grid,
            in_specs=[
                pl.BlockSpec((tm, tk), lambda i, j, k: (i, k)),
                pl.BlockSpec((tk, tn), lambda i, j, k: (k, j)),
                pl.BlockSpec((1, tn), lambda i, j, k: (0, j)),
            ],
            out_specs=pl.BlockSpec((tm, tn), lambda i, j, k: (i, j)),
            scratch_shapes=[pltpu.VMEM((tm, tn), jnp.float32)],
        ),
        compiler_params=pltpu.CompilerParams(
            dimension_semantics=("parallel", "parallel", "arbitrary"),
            vmem_limit_bytes=32 * 1024 * 1024,   # safe on v5e/v6e/v7x
        ),
    )(x2d, w, b.reshape(1, N))


# ---------------------------------------------------------------------------
# Full FeedForward forward pass
# ---------------------------------------------------------------------------
def feedforward_forward(x, params, *, compute_dtype=None):
    """x: (..., dim).  compute_dtype=jnp.bfloat16 enables the bf16 MXU path."""
    orig_shape = x.shape
    dim = orig_shape[-1]
    x2d = x.reshape(-1, dim)

    w1, b1, w2, b2 = params["w1"], params["b1"], params["w2"], params["b2"]
    if compute_dtype is not None:
        x2d = x2d.astype(compute_dtype)
        w1 = w1.astype(compute_dtype)
        w2 = w2.astype(compute_dtype)

    # Linear(dim->hidden) + GELU, fused.  (Dropout p=0 -> identity.)
    h = pallas_linear(x2d, w1, b1, apply_gelu=True,
                      out_dtype=(compute_dtype or jnp.float32))
    # Linear(hidden->dim) + bias, fused.  (Dropout p=0 -> identity.)
    y = pallas_linear(h, w2, b2, apply_gelu=False, out_dtype=jnp.float32)
    return y.reshape(orig_shape)


def init_params(key, dim, hidden_dim):
    # PyTorch nn.Linear default init: U(-1/sqrt(fan_in), 1/sqrt(fan_in)).
    # Weights stored pre-transposed for x @ W.
    k1, k2, k3, k4 = jax.random.split(key, 4)
    b_in = 1.0 / math.sqrt(dim)
    b_hid = 1.0 / math.sqrt(hidden_dim)
    return {
        "w1": jax.random.uniform(k1, (dim, hidden_dim), jnp.float32, -b_in, b_in),
        "b1": jax.random.uniform(k2, (hidden_dim,), jnp.float32, -b_in, b_in),
        "w2": jax.random.uniform(k3, (hidden_dim, dim), jnp.float32, -b_hid, b_hid),
        "b2": jax.random.uniform(k4, (dim,), jnp.float32, -b_hid, b_hid),
    }


# ---------------------------------------------------------------------------
# Pure-JAX reference (correctness check)
# ---------------------------------------------------------------------------
def feedforward_reference(x, params):
    h = jax.nn.gelu(x @ params["w1"] + params["b1"], approximate=False)
    return h @ params["w2"] + params["b2"]


if __name__ == "__main__":
    # Small shapes consistent with the module: batch=2, seq=8, dim=32, hidden=128.
    B, N, dim, hidden_dim = 2, 8, 32, 128

    key = jax.random.PRNGKey(0)
    kx, kp = jax.random.split(key)
    x = jax.random.normal(kx, (B, N, dim), jnp.float32)
    params = init_params(kp, dim, hidden_dim)

    # f32 path: tight tolerance vs reference.
    y = jax.block_until_ready(feedforward_forward(x, params))
    y_ref = feedforward_reference(x, params)
    assert y.shape == (B, N, dim)
    assert jnp.allclose(y, y_ref, atol=1e-4, rtol=1e-4), "f32 mismatch vs reference"

    # bf16 MXU-input path (v6e/v7x optimization): looser tolerance.
    y_bf16 = jax.block_until_ready(
        feedforward_forward(x, params, compute_dtype=jnp.bfloat16))
    assert jnp.allclose(y_bf16, y_ref, atol=3e-2, rtol=3e-2), "bf16 mismatch vs reference"

    print("KERNEL_OK")
</pallas_src>

<mosaic_0001>
module attributes {stable_mosaic.version = 11 : i64} {
  func.func @_linear_kernel(%arg0: i32, %arg1: i32, %arg2: i32, %arg3: memref<16x32xf32, #tpu.memory_space<vmem>>, %arg4: memref<32x128xf32, #tpu.memory_space<vmem>>, %arg5: memref<1x128xf32, #tpu.memory_space<vmem>>, %arg6: memref<16x128xf32, #tpu.memory_space<vmem>>, %arg7: memref<16x128xf32, #tpu.memory_space<vmem>>) attributes {dimension_semantics = [#tpu.dimension_semantics<parallel>, #tpu.dimension_semantics<parallel>, #tpu.dimension_semantics<arbitrary>], iteration_bounds = array<i64: 1, 1, 1>, scalar_prefetch = 0 : i64, scratch_operands = 1 : i64, tpu.core_type = #tpu.core_type<tc>, window_params = [{transform_indices = @transform_0, window_bounds = array<i64: 16, 32>}, {transform_indices = @transform_1, window_bounds = array<i64: 32, 128>}, {transform_indices = @transform_2, window_bounds = array<i64: 1, 128>}, {transform_indices = @transform_3, window_bounds = array<i64: 16, 128>}]} {
    %c0_i32 = arith.constant 0 : i32
    %0 = arith.cmpi eq, %arg2, %c0_i32 : i32
    %1 = arith.extui %0 : i1 to i32
    %c0_i32_0 = arith.constant 0 : i32
    %2 = arith.cmpi ne, %1, %c0_i32_0 : i32
    scf.if %2 {
      %cst_10 = arith.constant 0.000000e+00 : f32
      %12 = vector.broadcast %cst_10 : f32 to vector<16x128xf32>
      %c0_11 = arith.constant 0 : index
      %c0_12 = arith.constant 0 : index
      %13 = vector.load %arg7[%c0_11, %c0_12] : memref<16x128xf32, #tpu.memory_space<vmem>>, vector<16x128xf32>
      tpu.vector_store %arg7[%c0_11, %c0_12], %12 {strides = array<i32>} : memref<16x128xf32, #tpu.memory_space<vmem>>, vector<16x128xf32>,
    } else {
    }
    %c0 = arith.constant 0 : index
    %c0_1 = arith.constant 0 : index
    %3 = vector.load %arg7[%c0, %c0_1] : memref<16x128xf32, #tpu.memory_space<vmem>>, vector<16x128xf32>
    %c0_2 = arith.constant 0 : index
    %c0_3 = arith.constant 0 : index
    %4 = vector.load %arg3[%c0_2, %c0_3] : memref<16x32xf32, #tpu.memory_space<vmem>>, vector<16x32xf32>
    %c0_4 = arith.constant 0 : index
    %c0_5 = arith.constant 0 : index
    %5 = vector.load %arg4[%c0_4, %c0_5] : memref<32x128xf32, #tpu.memory_space<vmem>>, vector<32x128xf32>
    %cst = arith.constant dense<0.000000e+00> : vector<16x128xf32>
    %6 = tpu.matmul %4, %5, %cst {dimension_numbers = #tpu.dot_dimension_numbers<[1], [0], [0], [1], [0, 0, 1, 1], [], []>} : vector<16x32xf32>, vector<32x128xf32>, vector<16x128xf32> -> vector<16x128xf32>
    %7 = arith.addf %3, %6 : vector<16x128xf32>
    %c0_6 = arith.constant 0 : index
    %c0_7 = arith.constant 0 : index
    %8 = vector.load %arg7[%c0_6, %c0_7] : memref<16x128xf32, #tpu.memory_space<vmem>>, vector<16x128xf32>
    tpu.vector_store %arg7[%c0_6, %c0_7], %7 {strides = array<i32>} : memref<16x128xf32, #tpu.memory_space<vmem>>, vector<16x128xf32>,
    %c0_i32_8 = arith.constant 0 : i32
    %9 = arith.cmpi eq, %arg2, %c0_i32_8 : i32
    %10 = arith.extui %9 : i1 to i32
    %c0_i32_9 = arith.constant 0 : i32
    %11 = arith.cmpi ne, %10, %c0_i32_9 : i32
    scf.if %11 {
      %c0_10 = arith.constant 0 : index
      %c0_11 = arith.constant 0 : index
      %12 = vector.load %arg7[%c0_10, %c0_11] : memref<16x128xf32, #tpu.memory_space<vmem>>, vector<16x128xf32>
      %c0_12 = arith.constant 0 : index
      %c0_13 = arith.constant 0 : index
      %13 = vector.load %arg5[%c0_12, %c0_13] : memref<1x128xf32, #tpu.memory_space<vmem>>, vector<1x128xf32>
      %14 = vector.broadcast %13 : vector<1x128xf32> to vector<16x128xf32>
      %15 = arith.addf %12, %14 : vector<16x128xf32>
      %cst_14 = arith.constant 5.000000e-01 : f32
      %16 = vector.broadcast %cst_14 : f32 to vector<16x128xf32>
      %17 = arith.mulf %16, %15 : vector<16x128xf32>
      %cst_15 = arith.constant 0.707106769 : f32
      %18 = vector.broadcast %cst_15 : f32 to vector<16x128xf32>
      %19 = arith.mulf %15, %18 : vector<16x128xf32>
      %20 = math.absf %19 : vector<16x128xf32>
      %cst_16 = arith.constant 0.327591091 : f32
      %21 = vector.broadcast %cst_16 : f32 to vector<16x128xf32>
      %22 = arith.mulf %21, %20 : vector<16x128xf32>
      %cst_17 = arith.constant 1.000000e+00 : f32
      %23 = vector.broadcast %cst_17 : f32 to vector<16x128xf32>
      %24 = arith.addf %23, %22 : vector<16x128xf32>
      %cst_18 = arith.constant 1.000000e+00 : f32
      %25 = vector.broadcast %cst_18 : f32 to vector<16x128xf32>
      %26 = arith.divf %25, %24 : vector<16x128xf32>
      %cst_19 = arith.constant 1.06140542 : f32
      %27 = vector.broadcast %cst_19 : f32 to vector<16x128xf32>
      %28 = arith.mulf %26, %27 : vector<16x128xf32>
      %cst_20 = arith.constant -1.45315206 : f32
      %29 = vector.broadcast %cst_20 : f32 to vector<16x128xf32>
      %30 = arith.addf %29, %28 : vector<16x128xf32>
      %31 = arith.mulf %26, %30 : vector<16x128xf32>
      %cst_21 = arith.constant 1.42141378 : f32
      %32 = vector.broadcast %cst_21 : f32 to vector<16x128xf32>
      %33 = arith.addf %32, %31 : vector<16x128xf32>
      %34 = arith.mulf %26, %33 : vector<16x128xf32>
      %cst_22 = arith.constant -0.284496725 : f32
      %35 = vector.broadcast %cst_22 : f32 to vector<16x128xf32>
      %36 = arith.addf %35, %34 : vector<16x128xf32>
      %37 = arith.mulf %26, %36 : vector<16x128xf32>
      %cst_23 = arith.constant 0.254829586 : f32
      %38 = vector.broadcast %cst_23 : f32 to vector<16x128xf32>
      %39 = arith.addf %38, %37 : vector<16x128xf32>
      %40 = arith.mulf %26, %39 : vector<16x128xf32>
      %cst_24 = arith.constant 0.000000e+00 : f32
      %41 = vector.broadcast %cst_24 : f32 to vector<16x128xf32>
      %42 = arith.subf %41, %20 : vector<16x128xf32>
      %43 = arith.mulf %42, %20 : vector<16x128xf32>
      %44 = math.exp %43 : vector<16x128xf32>
      %45 = arith.mulf %40, %44 : vector<16x128xf32>
      %cst_25 = arith.constant 1.000000e+00 : f32
      %46 = vector.broadcast %cst_25 : f32 to vector<16x128xf32>
      %47 = arith.subf %46, %45 : vector<16x128xf32>
      %cst_26 = arith.constant 0.000000e+00 : f32
      %48 = vector.broadcast %cst_26 : f32 to vector<16x128xf32>
      %49 = arith.cmpf olt, %19, %48 : vector<16x128xf32>
      %cst_27 = arith.constant 0.000000e+00 : f32
      %50 = vector.broadcast %cst_27 : f32 to vector<16x128xf32>
      %51 = arith.subf %50, %47 : vector<16x128xf32>
      %52 = arith.select %49, %51, %47 : vector<16x128xi1>, vector<16x128xf32>
      %cst_28 = arith.constant 1.000000e+00 : f32
      %53 = vector.broadcast %cst_28 : f32 to vector<16x128xf32>
      %54 = arith.addf %53, %52 : vector<16x128xf32>
      %55 = arith.mulf %17, %54 : vector<16x128xf32>
      %c0_29 = arith.constant 0 : index
      %c0_30 = arith.constant 0 : index
      %56 = vector.load %arg6[%c0_29, %c0_30] : memref<16x128xf32, #tpu.memory_space<vmem>>, vector<16x128xf32>
      tpu.vector_store %arg6[%c0_29, %c0_30], %55 {strides = array<i32>} : memref<16x128xf32, #tpu.memory_space<vmem>>, vector<16x128xf32>,
    } else {
    }
    return
  }
  func.func @transform_0(%arg0: i32, %arg1: i32, %arg2: i32) -> (i32, i32) {
    %c0_i32 = arith.constant 0 : i32
    return %arg0, %arg2 : i32, i32
  }
  func.func @transform_1(%arg0: i32, %arg1: i32, %arg2: i32) -> (i32, i32) {
    %c0_i32 = arith.constant 0 : i32
    return %arg2, %arg1 : i32, i32
  }
  func.func @transform_2(%arg0: i32, %arg1: i32, %arg2: i32) -> (i32, i32) {
    %c0_i32 = arith.constant 0 : i32
    %c0_i32_0 = arith.constant 0 : i32
    return %c0_i32, %arg1 : i32, i32
  }
  func.func @transform_3(%arg0: i32, %arg1: i32, %arg2: i32) -> (i32, i32) {
    %c0_i32 = arith.constant 0 : i32
    return %arg0, %arg1 : i32, i32
  }
}

</mosaic_0001>

<bundles_post_ra>
// kernel: tpu_custom_call.1
= control target key start
LH: loop header
LB: loop body
LE: loop exit
PB: predicated region body
PF: predicated region fallthrough
CT: control target
= control target key end

     0   :  { %8 = vsyncpa [#allocation4], 0  ;;  %s417_s0 = inlined_call_operand.hbm [shape: f32[16,32], index: 0, kind: input, shape index: {}]   ;;  %s418_s1 = inlined_call_operand.hbm [shape: f32[32,128], index: 1, kind: input, shape index: {}]   ;;  %s419_s2 = inlined_call_operand.vmem [shape: f32[1,128], index: 2, kind: input, shape index: {}]   ;;  %s420_s3 = inlined_call_operand.hbm [shape: f32[16,128], index: 3, kind: output, shape index: {}]  }
   0x1   :  { %9 = vsyncpa [#allocation7], 0 }
   0x2   :  { %10 = vsyncpa [#allocation5], 0  ;;  %s344_s12 = smov [#allocation3]   ;;  %s272_s16 = scalar_lea.hbm %s417_s0, 256 }
   0x3   :  { %s16_s13 = sshll.u32 %s344_s12, 4  ;;  %p273_p0 = scmp.ne.s32.totalorder %s417_s0, %s272_s16  ;;  %s17_s13 = int_to_ptr.vmem [resolvable:$true] %s16_s13 }
   0x4   :  { %p276_p1 = scmp.lt.u32.totalorder %s272_s16, %s417_s0 }
   0x6   :  { %p278_p2 = pnand %p276_p1, %p273_p0 }
   0x8   :  { %281 = shalt.err (!%p278_p2)
}
   0x9   :  { %s282_s21 = scalar_lea.vmem %s17_s13, 256  ;;  %p287_p4 = scmp.lt.s32.totalorder %s17_s13, %s17_s13 }
   0xa   :  { %p283_p3 = scmp.ne.s32.totalorder %s17_s13, %s282_s21  ;;  %p288_p5 = scmp.lt.s32.totalorder %s282_s21, %s282_s21 }
   0xc   :  { %p289_p6 = por %p288_p5, %p287_p4 }
   0xe   :  { %p290_p7 = pnand %p289_p6, %p283_p3 }
  0x10   :  { %293 = shalt.err (!%p290_p7)
}
  0x11   :  { %s345_s22 = smov 128   ;;  %s346_s23 = smov 8  }
  0x12   :  { %22 = dma.hbm_to_vmem [thread:$0]  %s417_s0, 256, %s17_s13, [#allocation4], %s345_s22, %s345_s22, %s346_s23  }
  0x13   :  { %s347_s26 = smov [#allocation6]   ;;  %s294_s30 = scalar_lea.hbm %s418_s1, 512 }
  0x14   :  { %s28_s27 = sshll.u32 %s347_s26, 4  ;;  %p295_p8 = scmp.ne.s32.totalorder %s418_s1, %s294_s30  ;;  %s29_s27 = int_to_ptr.vmem [resolvable:$true] %s28_s27 }
  0x15   :  { %p298_p9 = scmp.lt.u32.totalorder %s294_s30, %s418_s1 }
  0x17   :  { %p300_p10 = pnand %p298_p9, %p295_p8 }
  0x19   :  { %303 = shalt.err (!%p300_p10)
}
  0x1a   :  { %s304_s8 = scalar_lea.vmem %s29_s27, 512  ;;  %p309_p12 = scmp.lt.s32.totalorder %s29_s27, %s29_s27 }
  0x1b   :  { %p305_p11 = scmp.ne.s32.totalorder %s29_s27, %s304_s8  ;;  %p310_p13 = scmp.lt.s32.totalorder %s304_s8, %s304_s8 }
  0x1d   :  { %p311_p0 = por %p310_p13, %p309_p12 }
  0x1f   :  { %p312_p1 = pnand %p311_p0, %p305_p11 }
  0x21   :  { %315 = shalt.err (!%p312_p1)
}
  0x22   :  { %34 = dma.hbm_to_vmem [thread:$0]  %s418_s1, 512, %s29_s27, [#allocation7], %s345_s22, %s345_s22, %s346_s23  }
  0x23   :  { %338 = dma.done.wait [#allocation4], 256  }
  0x24   :  { %339 = vsyncadd [#allocation4], 4294967040 }
  0x25   :  { %340 = dma.done.wait [#allocation7], 512  }
  0x26   :  { %341 = vsyncadd [#allocation7], 4294966784  ;;  %vm57_vm0 = vcmask 261120   ;;  %v53_v0 = vld [vmem:[#allocation6] sm:$0xff]  ;;  %v54_v1 = vld [vmem:[#allocation6 + $0x8] sm:$0xff] }
  0x27   :  { %v55_v2 = vld [vmem:[#allocation6 + $0x10] sm:$0xff]  ;;  %v251_v3 = vpack.c.bf16 %v54_v1, %v53_v0  ;;  %v56_v4 = vld [vmem:[#allocation6 + $0x18] sm:$0xff] }
  0x28   :  { %v51_v5 = vld [vmem:[#allocation3] sm:$0xff]  ;;  %v255_v6 = vpack.c.bf16 %v56_v4, %v55_v2  ;;  %v52_v7 = vld [vmem:[#allocation3 + $0x8] sm:$0xff] }
  0x29   :  { %248 = vmatprep.mubr.msk.f32.mxu0 %vm57_vm0, %v51_v5  ;;  %252 = vmatprep.subr.bf16.mxu0 %v251_v3  ;;  %v233_v8 = vld [vmem:[%s419_s2] ss:$0 sm:$0xff]  ;;  %s348_s2 = smov [#allocation8]  }
  0x2a   :  { %254 = vmatpush3.bf16.msra.mxu0 %v251_v3  ;;  %s218_s11 = sshll.u32 %s348_s2, 4  ;;  %s219_s11 = int_to_ptr.vmem [resolvable:$true] %s218_s11 }
  0x2b   :  { %256 = vmatprep.subr.bf16.mxu0 %v255_v6  ;;  %s316_s12 = scalar_lea.vmem %s219_s11, 256  ;;  %p321_p3 = scmp.lt.s32.totalorder %s219_s11, %s219_s11 }
  0x2c   :  { %p317_p2 = scmp.ne.s32.totalorder %s219_s11, %s316_s12  ;;  %p322_p4 = scmp.lt.s32.totalorder %s316_s12, %s316_s12 }
  0x2e   :  { %258 = vmatpush3.bf16.msra.mxu0 %v255_v6  ;;  %p323_p5 = por %p322_p4, %p321_p3 }
  0x30   :  { %p324_p6 = pnand %p323_p5, %p317_p2 }
  0x31   :  { %249 = vmatmul.mubr.msk.f32.vlgmr.msra.gmra.mrb[0].mxu0 %vm57_vm0, %v52_v7 }
 0x104   :  { %v250_v9 = vpop.f32.mrb[0].mxu0 }
 0x105   :  { %v156_v10 = vadd.f32 %v250_v9, %v233_v8  ;;  %v130_v11 = vpop.f32.mrb[1].mxu0 }
 0x106   :  { %v155_v12 = vadd.f32 %v233_v8, %v130_v11 }
 0x107   :  { %v160_v13 = vmul.f32 0.70710677, %v156_v10  ;;  %v158_v56 = vmul.f32 0.5, %v156_v10 }
 0x108   :  { %v159_v14 = vmul.f32 0.70710677, %v155_v12  ;;  %v157_v59 = vmul.f32 0.5, %v155_v12 }
 0x109   :  { %v162_v15 = vand.u32 2147483647, %v160_v13  ;;  %vm202_vm1 = vcmp.lt.f32.partialorder %v160_v13, 0.0 }
 0x10a   :  { %v161_v16 = vand.u32 2147483647, %v159_v14  ;;  %vm201_vm2 = vcmp.lt.f32.partialorder %v159_v14, 0.0 }
 0x10b   :  { %v164_v17 = vmul.f32 0.3275911, %v162_v15  ;;  %v190_v21 = vsub.f32 0.0, %v162_v15 }
 0x10c   :  { %v163_v18 = vmul.f32 0.3275911, %v161_v16  ;;  %v189_v22 = vsub.f32 0.0, %v161_v16 }
 0x10d   :  { %v166_v19 = vadd.f32 1.0, %v164_v17  ;;  %v192_v24 = vmul.f32 %v190_v21, %v162_v15 }
 0x10e   :  { %v165_v20 = vadd.f32 1.0, %v163_v18  ;;  %v191_v27 = vmul.f32 %v189_v22, %v161_v16 }
 0x10f   :  { %264 = vrcp.f32 %v166_v19  ;;  %v195_v30 = vmul.f32 1.442695, %v192_v24 }
 0x110   :  { %266 = vrcp.f32 %v165_v20  ;;  %v193_v33 = vmul.f32 1.442695, %v191_v27 }
 0x111   :  { %268 = vpow2.f32 %v195_v30 }
 0x112   :  { %270 = vpow2.f32 %v193_v33 }
 0x119   :  { %v265_v23 = vpop.eup %264 }
 0x11a   :  { %v267_v25 = vpop.eup %266  ;;  %v172_v26 = vmul.f32 1.0614054, %v265_v23 }
 0x11b   :  { %v171_v28 = vmul.f32 1.0614054, %v267_v25  ;;  %v269_v46 = vpop.eup %268 }
 0x11c   :  { %v174_v29 = vadd.f32 -1.4531521, %v172_v26  ;;  %v271_v48 = vpop.eup %270 }
 0x11d   :  { %v173_v31 = vadd.f32 -1.4531521, %v171_v28 }
 0x11e   :  { %v176_v32 = vmul.f32 %v265_v23, %v174_v29 }
 0x11f   :  { %v175_v34 = vmul.f32 %v267_v25, %v173_v31 }
 0x120   :  { %v178_v35 = vadd.f32 1.4214138, %v176_v32 }
 0x121   :  { %v177_v36 = vadd.f32 1.4214138, %v175_v34 }
 0x122   :  { %v180_v37 = vmul.f32 %v265_v23, %v178_v35 }
 0x123   :  { %v179_v38 = vmul.f32 %v267_v25, %v177_v36 }
 0x124   :  { %v182_v39 = vadd.f32 -0.28449672, %v180_v37 }
 0x125   :  { %v181_v40 = vadd.f32 -0.28449672, %v179_v38 }
 0x126   :  { %v184_v41 = vmul.f32 %v265_v23, %v182_v39 }
 0x127   :  { %v183_v42 = vmul.f32 %v267_v25, %v181_v40 }
 0x128   :  { %v186_v43 = vadd.f32 0.2548296, %v184_v41 }
 0x129   :  { %v185_v44 = vadd.f32 0.2548296, %v183_v42 }
 0x12a   :  { %v188_v45 = vmul.f32 %v265_v23, %v186_v43 }
 0x12b   :  { %v187_v47 = vmul.f32 %v267_v25, %v185_v44 }
 0x12c   :  { %v198_v49 = vmul.f32 %v269_v46, %v188_v45 }
 0x12d   :  { %v197_v50 = vmul.f32 %v271_v48, %v187_v47 }
 0x12e   :  { %v200_v51 = vsub.f32 1.0, %v198_v49 }
 0x12f   :  { %v199_v52 = vsub.f32 1.0, %v197_v50 }
 0x130   :  { %v204_v53 = vsub.f32 0.0, %v200_v51 }
 0x131   :  { %v203_v54 = vsub.f32 0.0, %v199_v52 }
 0x132   :  { %v206_v55 = vsel %vm202_vm1, %v204_v53, %v200_v51 }
 0x133   :  { %v208_v57 = vadd.f32 1.0, %v206_v55  ;;  %v205_v58 = vsel %vm201_vm2, %v203_v54, %v199_v52 }
 0x134   :  { %v207_v60 = vadd.f32 1.0, %v205_v58 }
 0x135   :  { %v210_v61 = vmul.f32 %v208_v57, %v158_v56 }
 0x136   :  { %v209_v62 = vmul.f32 %v207_v60, %v157_v59 }
 0x137   :  { %212 = vst [vmem:[#allocation8 + $0x8] sm:$0xff] %v210_v61 }
 0x138   :  { %211 = vst [vmem:[#allocation8] sm:$0xff] %v209_v62 }
 0x139   :  { %327 = shalt.err (!%p324_p6)
}
 0x13a   :  { %s328_s15 = scalar_lea.hbm %s420_s3, 256 }
 0x13b   :  { %p329_p7 = scmp.ne.s32.totalorder %s420_s3, %s328_s15  ;;  %p332_p8 = scmp.lt.u32.totalorder %s328_s15, %s420_s3 }
 0x13d   :  { %p334_p9 = pnand %p332_p8, %p329_p7 }
 0x13f   :  { %337 = shalt.err (!%p334_p9)
}
 0x140   :  { %224 = dma.vmem_to_hbm [thread:$0]  %s219_s11, 256, %s420_s3, [#allocation5], %s345_s22, %s345_s22, %s346_s23  }
 0x141   :  { %342 = dma.done.wait [#allocation5], 256  }
 0x142   :  { %343 = vsyncadd [#allocation5], 4294967040 }
 0x143   :  { %228 = vsyncpa [#allocation4], 1 }
 0x144   :  { %229 = vsyncpa [#allocation7], 1 }
 0x145   :  { %230 = vsyncpa [#allocation5], 1 }

</bundles_post_ra>
